<compile_context>
chip_gen: v7x
topology: tpu7x:2x2x1
jax: 0.10.0
libtpu: 0.0.40
codegen_flags: <defaults>
</compile_context>

<pallas_src>
import jax
import jax.numpy as jnp
from jax.experimental import pallas as pl
from jax.experimental.pallas import tpu as pltpu

NUM_CLASSES = 21


def _multibox_kernel(locp_ref, loct_ref, confpt_ref, tgtr_ref, out_ref):
    imgs, C, N = confpt_ref.shape

    # hoisted constants (shared by every image in this grid step)
    lane3 = jax.lax.broadcasted_iota(jnp.int32, (1, 3), 1)
    cls_iota = jax.lax.broadcasted_iota(jnp.int32, (C, N), 0)

    for ib in range(imgs):                      # small, static, unrolled
        locp = locp_ref[ib]                     # [4, N]  lane-dense
        loct = loct_ref[ib]                     # [4, N]
        confpt = confpt_ref[ib]                 # [C, N]  classes on sublanes
        tgt_r = tgtr_ref[ib]                    # [1, N]  int32

        pos_r = tgt_r > 0                                         # [1, N]
        posf_r = jnp.where(pos_r, 1.0, 0.0)                       # [1, N]
        num_pos = jnp.sum(posf_r, axis=1, keepdims=True)          # (1, 1)

        # ---- Smooth-L1 (beta=1, reduction='sum') over positive boxes --------
        d = locp - loct
        ad = jnp.abs(d)
        sl1 = jnp.where(ad < 1.0, 0.5 * d * d, ad - 0.5) * posf_r  # [4, N]
        loc_b = jnp.sum(jnp.sum(sl1, axis=1, keepdims=True),
                        axis=0, keepdims=True)                     # (1, 1)

        # ---- per-box cross entropy, single lane-dense [C, N] pass ------------
        xmax = jnp.max(confpt, axis=0, keepdims=True)              # [1, N]
        lse = jnp.log(jnp.sum(jnp.exp(confpt - xmax),
                              axis=0, keepdims=True)) + xmax       # [1, N]
        xy = jnp.sum(jnp.where(cls_iota == tgt_r, confpt, 0.0),
                     axis=0, keepdims=True)                        # [1, N]
        ce_r = lse - xy                                            # [1, N] >= 0

        # ---- hard negative mining: K-th largest masked CE via bit bisection --
        # Selected conf loss = sum_{pos} ce + (sum of the K largest masked CE),
        # which is tie-break independent, so we only need the exact K-th value.
        m_r = jnp.where(pos_r, 0.0, ce_r)                          # [1, N] >= 0
        num_neg = jnp.minimum(3.0 * num_pos, jnp.float32(N - 1))   # (1, 1) = K

        # non-negative f32 bit patterns are order-preserving as int32
        mbits = pltpu.bitcast(m_r, jnp.int32)                      # [1, N]
        hi0 = pltpu.bitcast(jnp.max(m_r, axis=1, keepdims=True), jnp.int32)
        lo0 = jnp.zeros_like(hi0)

        def bisect(_, carry):
            lo, hi = carry
            mid = lo + ((hi - lo + 1) >> 1)
            cnt = jnp.sum(jnp.where(mbits >= mid, 1.0, 0.0),
                          axis=1, keepdims=True)
            take = cnt >= num_neg            # still >= K values at/above mid?
            return jnp.where(take, mid, lo), jnp.where(take, hi, mid - 1)

        lo_f, _ = jax.lax.fori_loop(0, 32, bisect, (lo0, hi0))
        t_star = pltpu.bitcast(lo_f, jnp.float32)      # (1,1): K-th largest m

        gt = m_r > t_star                                          # [1, N]
        c_gt = jnp.sum(jnp.where(gt, 1.0, 0.0), axis=1, keepdims=True)
        sel = jnp.logical_or(pos_r, gt)
        conf_b = jnp.sum(jnp.where(sel, ce_r, 0.0), axis=1, keepdims=True)
        conf_b = conf_b + (num_neg - c_gt) * t_star    # threshold-tied negs

        # ---- pack the three per-image partials into one lane-packed store ----
        out_ref[ib] = (jnp.where(lane3 == 0, loc_b, 0.0)
                       + jnp.where(lane3 == 1, conf_b, 0.0)
                       + jnp.where(lane3 == 2, num_pos, 0.0))


def _images_per_step(batch: int) -> int:
    # Amortize per-step overhead, but keep >= 2 grid steps so v7x's two
    # TensorCores both get work when the batch allows it.
    for ib in (8, 4, 2):
        if batch % ib == 0 and batch // ib >= 2:
            return ib
    return 1


@jax.jit
def multibox_loss(loc_preds, loc_targets, conf_preds, conf_targets):
    """loss = (SmoothL1_sum(pos) + CE_sum(pos | hard_neg)) / num_matched_boxes."""
    B, N, _ = loc_preds.shape
    C = conf_preds.shape[-1]

    # lane-dense layouts: boxes on lanes everywhere
    locp_t = jnp.transpose(loc_preds, (0, 2, 1))        # [B, 4, N]
    loct_t = jnp.transpose(loc_targets, (0, 2, 1))      # [B, 4, N]
    confp_t = jnp.transpose(conf_preds, (0, 2, 1))      # [B, C, N]
    tgt_row = conf_targets.astype(jnp.int32).reshape(B, 1, N)

    ib = _images_per_step(B)

    out = pl.pallas_call(
        _multibox_kernel,
        out_shape=jax.ShapeDtypeStruct((B, 1, 3), jnp.float32),
        grid_spec=pltpu.PrefetchScalarGridSpec(
            num_scalar_prefetch=0,
            grid=(B // ib,),
            in_specs=[
                pl.BlockSpec((ib, 4, N), lambda b: (b, 0, 0)),   # loc_preds
                pl.BlockSpec((ib, 4, N), lambda b: (b, 0, 0)),   # loc_targets
                pl.BlockSpec((ib, C, N), lambda b: (b, 0, 0)),   # conf [C, N]
                pl.BlockSpec((ib, 1, N), lambda b: (b, 0, 0)),   # targets row
            ],
            out_specs=pl.BlockSpec((ib, 1, 3), lambda b: (b, 0, 0)),
        ),
        compiler_params=pltpu.CompilerParams(
            dimension_semantics=("parallel",),
            vmem_limit_bytes=32 * 1024 * 1024),
    )(locp_t, loct_t, confp_t, tgt_row)

    loc_s, conf_s, npos = out[:, 0, 0], out[:, 0, 1], out[:, 0, 2]
    num_matched = jnp.sum(npos)
    total = (jnp.sum(loc_s) + jnp.sum(conf_s)) / jnp.maximum(num_matched, 1.0)
    # PyTorch returns 0 when there are no matched boxes.
    return jnp.where(num_matched > 0, total, jnp.float32(0.0))


def _reference(loc_preds, loc_targets, conf_preds, conf_targets):
    """Pure-JAX mirror of the PyTorch forward (sort-based hard-neg mining)."""
    B, N, _ = loc_preds.shape
    C = conf_preds.shape[-1]
    pos = conf_targets > 0
    num_matched = jnp.sum(pos).astype(jnp.float32)

    d = loc_preds - loc_targets
    ad = jnp.abs(d)
    sl1 = jnp.where(ad < 1.0, 0.5 * d * d, ad - 0.5)
    loc_loss = jnp.sum(sl1 * pos[..., None])

    x = conf_preds.reshape(-1, C)
    y = conf_targets.reshape(-1)
    xmax = jnp.max(x)
    lse = jnp.log(jnp.sum(jnp.exp(x - xmax), axis=1)) + xmax
    ce = lse - jnp.take_along_axis(x, y[:, None], axis=1)[:, 0]
    ce = ce.reshape(B, N)

    masked = jnp.where(pos, 0.0, ce)
    idx = jnp.argsort(-masked, axis=1)        # descending, stable
    rank = jnp.argsort(idx, axis=1)
    num_pos = jnp.sum(pos, axis=1)
    num_neg = jnp.minimum(3 * num_pos, N - 1)
    neg = rank < num_neg[:, None]
    sel = pos | neg
    conf_loss = jnp.sum(jnp.where(sel, ce, 0.0))
    return (loc_loss + conf_loss) / num_matched


if __name__ == "__main__":
    B, N, C = 2, 256, NUM_CLASSES
    key = jax.random.PRNGKey(0)
    k1, k2, k3, k4, k5 = jax.random.split(key, 5)
    loc_preds = jax.random.normal(k1, (B, N, 4), jnp.float32)
    loc_targets = jax.random.normal(k2, (B, N, 4), jnp.float32)
    conf_preds = jax.random.normal(k3, (B, N, C), jnp.float32)
    labels = jax.random.randint(k4, (B, N), 1, C)
    is_pos = jax.random.uniform(k5, (B, N)) < 0.12          # ~12% matched boxes
    conf_targets = jnp.where(is_pos, labels, 0).astype(jnp.int32)

    out = jax.block_until_ready(
        multibox_loss(loc_preds, loc_targets, conf_preds, conf_targets))
    ref = _reference(loc_preds, loc_targets, conf_preds, conf_targets)
    assert jnp.allclose(out, ref, rtol=1e-4, atol=1e-4), (float(out), float(ref))
    print("KERNEL_OK")
</pallas_src>

<mosaic_0001>
module attributes {stable_mosaic.version = 11 : i64} {
  func.func @_multibox_kernel(%arg0: i32, %arg1: memref<1x4x256xf32, #tpu.memory_space<vmem>>, %arg2: memref<1x4x256xf32, #tpu.memory_space<vmem>>, %arg3: memref<1x21x256xf32, #tpu.memory_space<vmem>>, %arg4: memref<1x1x256xi32, #tpu.memory_space<vmem>>, %arg5: memref<1x1x3xf32, #tpu.memory_space<vmem>>) attributes {dimension_semantics = [#tpu.dimension_semantics<parallel>], iteration_bounds = array<i64: 2>, scalar_prefetch = 0 : i64, scratch_operands = 0 : i64, tpu.core_type = #tpu.core_type<tc>, window_params = [{transform_indices = @transform_0, window_bounds = array<i64: 1, 4, 256>}, {transform_indices = @transform_1, window_bounds = array<i64: 1, 4, 256>}, {transform_indices = @transform_2, window_bounds = array<i64: 1, 21, 256>}, {transform_indices = @transform_3, window_bounds = array<i64: 1, 1, 256>}, {transform_indices = @transform_4, window_bounds = array<i64: 1, 1, 3>}]} {
    %0 = tpu.iota {dimensions = array<i32: 1>} : vector<1x3xi32>
    %1 = tpu.iota {dimensions = array<i32: 0>} : vector<21x256xi32>
    %c0 = arith.constant 0 : index
    %c0_0 = arith.constant 0 : index
    %c0_1 = arith.constant 0 : index
    %2 = vector.load %arg1[%c0, %c0_0, %c0_1] : memref<1x4x256xf32, #tpu.memory_space<vmem>>, vector<1x4x256xf32>
    %3 = vector.shape_cast %2 : vector<1x4x256xf32> to vector<4x256xf32>
    %c0_2 = arith.constant 0 : index
    %c0_3 = arith.constant 0 : index
    %c0_4 = arith.constant 0 : index
    %4 = vector.load %arg2[%c0_2, %c0_3, %c0_4] : memref<1x4x256xf32, #tpu.memory_space<vmem>>, vector<1x4x256xf32>
    %5 = vector.shape_cast %4 : vector<1x4x256xf32> to vector<4x256xf32>
    %c0_5 = arith.constant 0 : index
    %c0_6 = arith.constant 0 : index
    %c0_7 = arith.constant 0 : index
    %6 = vector.load %arg3[%c0_5, %c0_6, %c0_7] : memref<1x21x256xf32, #tpu.memory_space<vmem>>, vector<1x21x256xf32>
    %7 = vector.shape_cast %6 : vector<1x21x256xf32> to vector<21x256xf32>
    %c0_8 = arith.constant 0 : index
    %c0_9 = arith.constant 0 : index
    %c0_10 = arith.constant 0 : index
    %8 = vector.load %arg4[%c0_8, %c0_9, %c0_10] : memref<1x1x256xi32, #tpu.memory_space<vmem>>, vector<1x1x256xi32>
    %9 = vector.shape_cast %8 : vector<1x1x256xi32> to vector<1x256xi32>
    %c0_i32 = arith.constant 0 : i32
    %10 = vector.broadcast %c0_i32 : i32 to vector<1x256xi32>
    %11 = arith.cmpi sgt, %9, %10 : vector<1x256xi32>
    %cst = arith.constant 1.000000e+00 : f32
    %cst_11 = arith.constant 0.000000e+00 : f32
    %12 = vector.broadcast %cst : f32 to vector<1x256xf32>
    %13 = vector.broadcast %cst_11 : f32 to vector<1x256xf32>
    %14 = arith.select %11, %12, %13 : vector<1x256xi1>, vector<1x256xf32>
    %cst_12 = arith.constant dense<0.000000e+00> : vector<1xf32>
    %15 = vector.multi_reduction <add>, %14, %cst_12 [1] : vector<1x256xf32> to vector<1xf32>
    %16 = vector.shape_cast %15 : vector<1xf32> to vector<1x1xf32>
    %17 = arith.subf %3, %5 : vector<4x256xf32>
    %18 = math.absf %17 : vector<4x256xf32>
    %cst_13 = arith.constant 1.000000e+00 : f32
    %19 = vector.broadcast %cst_13 : f32 to vector<4x256xf32>
    %20 = arith.cmpf olt, %18, %19 : vector<4x256xf32>
    %cst_14 = arith.constant 5.000000e-01 : f32
    %21 = vector.broadcast %cst_14 : f32 to vector<4x256xf32>
    %22 = arith.mulf %21, %17 : vector<4x256xf32>
    %23 = arith.mulf %22, %17 : vector<4x256xf32>
    %cst_15 = arith.constant 5.000000e-01 : f32
    %24 = vector.broadcast %cst_15 : f32 to vector<4x256xf32>
    %25 = arith.subf %18, %24 : vector<4x256xf32>
    %26 = arith.select %20, %23, %25 : vector<4x256xi1>, vector<4x256xf32>
    %27 = vector.broadcast %14 : vector<1x256xf32> to vector<4x256xf32>
    %28 = arith.mulf %26, %27 : vector<4x256xf32>
    %cst_16 = arith.constant dense<0.000000e+00> : vector<4xf32>
    %29 = vector.multi_reduction <add>, %28, %cst_16 [1] : vector<4x256xf32> to vector<4xf32>
    %30 = vector.shape_cast %29 : vector<4xf32> to vector<4x1xf32>
    %cst_17 = arith.constant dense<0.000000e+00> : vector<1xf32>
    %31 = vector.multi_reduction <add>, %30, %cst_17 [0] : vector<4x1xf32> to vector<1xf32>
    %32 = vector.shape_cast %31 : vector<1xf32> to vector<1x1xf32>
    %cst_18 = arith.constant dense<0xFF800000> : vector<256xf32>
    %33 = vector.multi_reduction <maximumf>, %7, %cst_18 [0] : vector<21x256xf32> to vector<256xf32>
    %34 = vector.shape_cast %33 : vector<256xf32> to vector<1x256xf32>
    %35 = vector.broadcast %34 : vector<1x256xf32> to vector<21x256xf32>
    %36 = arith.subf %7, %35 : vector<21x256xf32>
    %37 = math.exp %36 : vector<21x256xf32>
    %cst_19 = arith.constant dense<0.000000e+00> : vector<256xf32>
    %38 = vector.multi_reduction <add>, %37, %cst_19 [0] : vector<21x256xf32> to vector<256xf32>
    %39 = vector.shape_cast %38 : vector<256xf32> to vector<1x256xf32>
    %40 = math.log %39 : vector<1x256xf32>
    %41 = arith.addf %40, %34 : vector<1x256xf32>
    %42 = vector.broadcast %9 : vector<1x256xi32> to vector<21x256xi32>
    %43 = arith.cmpi eq, %1, %42 : vector<21x256xi32>
    %cst_20 = arith.constant 0.000000e+00 : f32
    %44 = vector.broadcast %cst_20 : f32 to vector<21x256xf32>
    %45 = arith.select %43, %7, %44 : vector<21x256xi1>, vector<21x256xf32>
    %cst_21 = arith.constant dense<0.000000e+00> : vector<256xf32>
    %46 = vector.multi_reduction <add>, %45, %cst_21 [0] : vector<21x256xf32> to vector<256xf32>
    %47 = vector.shape_cast %46 : vector<256xf32> to vector<1x256xf32>
    %48 = arith.subf %41, %47 : vector<1x256xf32>
    %cst_22 = arith.constant 0.000000e+00 : f32
    %49 = vector.broadcast %cst_22 : f32 to vector<1x256xf32>
    %50 = arith.select %11, %49, %48 : vector<1x256xi1>, vector<1x256xf32>
    %cst_23 = arith.constant 3.000000e+00 : f32
    %51 = vector.broadcast %cst_23 : f32 to vector<1x1xf32>
    %52 = arith.mulf %51, %16 : vector<1x1xf32>
    %cst_24 = arith.constant 2.550000e+02 : f32
    %53 = vector.broadcast %cst_24 : f32 to vector<1x1xf32>
    %54 = arith.minimumf %52, %53 : vector<1x1xf32>
    %55 = tpu.bitcast %50 : vector<1x256xf32> -> vector<1x256xi32>
    %cst_25 = arith.constant dense<0xFF800000> : vector<1xf32>
    %56 = vector.multi_reduction <maximumf>, %50, %cst_25 [1] : vector<1x256xf32> to vector<1xf32>
    %57 = vector.shape_cast %56 : vector<1xf32> to vector<1x1xf32>
    %58 = tpu.bitcast %57 : vector<1x1xf32> -> vector<1x1xi32>
    %c0_i32_26 = arith.constant 0 : i32
    %59 = vector.broadcast %c0_i32_26 : i32 to vector<1x1xi32>
    %c0_i32_27 = arith.constant 0 : i32
    %c32_i32 = arith.constant 32 : i32
    %60 = arith.addi %c0_i32_27, %c32_i32 : i32
    %c1_i32 = arith.constant 1 : i32
    %61:2 = scf.for %arg6 = %c0_i32_27 to %60 step %c1_i32 iter_args(%arg7 = %59, %arg8 = %58) -> (vector<1x1xi32>, vector<1x1xi32>)  : i32 {
      %101 = arith.subi %arg8, %arg7 : vector<1x1xi32>
      %c1_i32_41 = arith.constant 1 : i32
      %102 = vector.broadcast %c1_i32_41 : i32 to vector<1x1xi32>
      %103 = arith.addi %101, %102 : vector<1x1xi32>
      %c1_i32_42 = arith.constant 1 : i32
      %104 = vector.broadcast %c1_i32_42 : i32 to vector<1x1xi32>
      %105 = arith.shrsi %103, %104 : vector<1x1xi32>
      %106 = arith.addi %arg7, %105 : vector<1x1xi32>
      %107 = vector.broadcast %106 : vector<1x1xi32> to vector<1x256xi32>
      %108 = arith.cmpi sge, %55, %107 : vector<1x256xi32>
      %cst_43 = arith.constant 1.000000e+00 : f32
      %cst_44 = arith.constant 0.000000e+00 : f32
      %109 = vector.broadcast %cst_43 : f32 to vector<1x256xf32>
      %110 = vector.broadcast %cst_44 : f32 to vector<1x256xf32>
      %111 = arith.select %108, %109, %110 : vector<1x256xi1>, vector<1x256xf32>
      %cst_45 = arith.constant dense<0.000000e+00> : vector<1xf32>
      %112 = vector.multi_reduction <add>, %111, %cst_45 [1] : vector<1x256xf32> to vector<1xf32>
      %113 = vector.shape_cast %112 : vector<1xf32> to vector<1x1xf32>
      %114 = arith.cmpf oge, %113, %54 : vector<1x1xf32>
      %115 = arith.select %114, %106, %arg7 : vector<1x1xi1>, vector<1x1xi32>
      %c1_i32_46 = arith.constant 1 : i32
      %116 = vector.broadcast %c1_i32_46 : i32 to vector<1x1xi32>
      %117 = arith.subi %106, %116 : vector<1x1xi32>
      %118 = arith.select %114, %arg8, %117 : vector<1x1xi1>, vector<1x1xi32>
      scf.yield %115, %118 : vector<1x1xi32>, vector<1x1xi32>
    }
    %62 = tpu.bitcast %61#0 : vector<1x1xi32> -> vector<1x1xf32>
    %63 = vector.broadcast %62 : vector<1x1xf32> to vector<1x256xf32>
    %64 = arith.cmpf ogt, %50, %63 : vector<1x256xf32>
    %cst_28 = arith.constant 1.000000e+00 : f32
    %cst_29 = arith.constant 0.000000e+00 : f32
    %65 = vector.broadcast %cst_28 : f32 to vector<1x256xf32>
    %66 = vector.broadcast %cst_29 : f32 to vector<1x256xf32>
    %67 = arith.select %64, %65, %66 : vector<1x256xi1>, vector<1x256xf32>
    %cst_30 = arith.constant dense<0.000000e+00> : vector<1xf32>
    %68 = vector.multi_reduction <add>, %67, %cst_30 [1] : vector<1x256xf32> to vector<1xf32>
    %69 = vector.shape_cast %68 : vector<1xf32> to vector<1x1xf32>
    %70 = arith.ori %11, %64 : vector<1x256xi1>
    %cst_31 = arith.constant 0.000000e+00 : f32
    %71 = vector.broadcast %cst_31 : f32 to vector<1x256xf32>
    %72 = arith.select %70, %48, %71 : vector<1x256xi1>, vector<1x256xf32>
    %cst_32 = arith.constant dense<0.000000e+00> : vector<1xf32>
    %73 = vector.multi_reduction <add>, %72, %cst_32 [1] : vector<1x256xf32> to vector<1xf32>
    %74 = vector.shape_cast %73 : vector<1xf32> to vector<1x1xf32>
    %75 = arith.subf %54, %69 : vector<1x1xf32>
    %76 = arith.mulf %75, %62 : vector<1x1xf32>
    %77 = arith.addf %74, %76 : vector<1x1xf32>
    %c0_i32_33 = arith.constant 0 : i32
    %78 = vector.broadcast %c0_i32_33 : i32 to vector<1x3xi32>
    %79 = arith.cmpi eq, %0, %78 : vector<1x3xi32>
    %cst_34 = arith.constant 0.000000e+00 : f32
    %80 = vector.shape_cast %32 : vector<1x1xf32> to vector<1x1xf32>
    %81 = vector.broadcast %80 : vector<1x1xf32> to vector<1x3xf32>
    %82 = vector.broadcast %cst_34 : f32 to vector<1x3xf32>
    %83 = arith.select %79, %81, %82 : vector<1x3xi1>, vector<1x3xf32>
    %c1_i32_35 = arith.constant 1 : i32
    %84 = vector.broadcast %c1_i32_35 : i32 to vector<1x3xi32>
    %85 = arith.cmpi eq, %0, %84 : vector<1x3xi32>
    %cst_36 = arith.constant 0.000000e+00 : f32
    %86 = vector.shape_cast %77 : vector<1x1xf32> to vector<1x1xf32>
    %87 = vector.broadcast %86 : vector<1x1xf32> to vector<1x3xf32>
    %88 = vector.broadcast %cst_36 : f32 to vector<1x3xf32>
    %89 = arith.select %85, %87, %88 : vector<1x3xi1>, vector<1x3xf32>
    %90 = arith.addf %83, %89 : vector<1x3xf32>
    %c2_i32 = arith.constant 2 : i32
    %91 = vector.broadcast %c2_i32 : i32 to vector<1x3xi32>
    %92 = arith.cmpi eq, %0, %91 : vector<1x3xi32>
    %cst_37 = arith.constant 0.000000e+00 : f32
    %93 = vector.shape_cast %16 : vector<1x1xf32> to vector<1x1xf32>
    %94 = vector.broadcast %93 : vector<1x1xf32> to vector<1x3xf32>
    %95 = vector.broadcast %cst_37 : f32 to vector<1x3xf32>
    %96 = arith.select %92, %94, %95 : vector<1x3xi1>, vector<1x3xf32>
    %97 = arith.addf %90, %96 : vector<1x3xf32>
    %c0_38 = arith.constant 0 : index
    %c0_39 = arith.constant 0 : index
    %c0_40 = arith.constant 0 : index
    %98 = vector.load %arg5[%c0_38, %c0_39, %c0_40] : memref<1x1x3xf32, #tpu.memory_space<vmem>>, vector<1x1x3xf32>
    %99 = vector.shape_cast %98 : vector<1x1x3xf32> to vector<1x3xf32>
    %100 = vector.shape_cast %97 : vector<1x3xf32> to vector<1x1x3xf32>
    tpu.vector_store %arg5[%c0_38, %c0_39, %c0_40], %100 {strides = array<i32>} : memref<1x1x3xf32, #tpu.memory_space<vmem>>, vector<1x1x3xf32>,
    return
  }
  func.func @transform_0(%arg0: i32) -> (i32, i32, i32) {
    %c0_i32 = arith.constant 0 : i32
    %c0_i32_0 = arith.constant 0 : i32
    %c0_i32_1 = arith.constant 0 : i32
    return %arg0, %c0_i32, %c0_i32_0 : i32, i32, i32
  }
  func.func @transform_1(%arg0: i32) -> (i32, i32, i32) {
    %c0_i32 = arith.constant 0 : i32
    %c0_i32_0 = arith.constant 0 : i32
    %c0_i32_1 = arith.constant 0 : i32
    return %arg0, %c0_i32, %c0_i32_0 : i32, i32, i32
  }
  func.func @transform_2(%arg0: i32) -> (i32, i32, i32) {
    %c0_i32 = arith.constant 0 : i32
    %c0_i32_0 = arith.constant 0 : i32
    %c0_i32_1 = arith.constant 0 : i32
    return %arg0, %c0_i32, %c0_i32_0 : i32, i32, i32
  }
  func.func @transform_3(%arg0: i32) -> (i32, i32, i32) {
    %c0_i32 = arith.constant 0 : i32
    %c0_i32_0 = arith.constant 0 : i32
    %c0_i32_1 = arith.constant 0 : i32
    return %arg0, %c0_i32, %c0_i32_0 : i32, i32, i32
  }
  func.func @transform_4(%arg0: i32) -> (i32, i32, i32) {
    %c0_i32 = arith.constant 0 : i32
    %c0_i32_0 = arith.constant 0 : i32
    %c0_i32_1 = arith.constant 0 : i32
    return %arg0, %c0_i32, %c0_i32_0 : i32, i32, i32
  }
}

</mosaic_0001>

<bundles_post_ra>
// kernel: multibox_loss.1
= control target key start
LH: loop header
LB: loop body
LE: loop exit
PB: predicated region body
PF: predicated region fallthrough
CT: control target
= control target key end

     0   :  { %s753_s15 = smov 0   ;;  %s897_s0 = inlined_call_operand.vmem [shape: f32[2,4,256], index: 0, kind: input, shape index: {}]   ;;  %s898_s1 = inlined_call_operand.vmem [shape: f32[2,4,256], index: 1, kind: input, shape index: {}]   ;;  %s899_s2 = inlined_call_operand.vmem [shape: f32[2,21,256], index: 2, kind: input, shape index: {}]   ;;  %s900_s3 = inlined_call_operand.vmem [shape: s32[2,1,256], index: 3, kind: input, shape index: {}]   ;;  %s901_s4 = inlined_call_operand.vmem [shape: f32[2,1,3], index: 4, kind: output, shape index: {}]  }
   0x1 LB: > { %s624_s16 = sadd.s32 4294967295, %s711_s15   ;;  %p628_p0 = scmp.ge.s32.totalorder %s711_s15, 1  ;;  %s711_s15 = sphi %s753_s15, %s14_s15  }
   0x2   : > { %p191_p1 = scmp.lt.s32.totalorder %s711_s15, 3 }
   0x4   : > { %p192_p2 = pnand %p628_p0, %p191_p1 }
   0x5   : > { %p229_p3 = scmp.lt.s32.totalorder (!%p192_p2), %s624_s16, 1  ;;  %v251_v0 = vlaneseq (!%p192_p2)  ;;  %vm311_vm0 = vcmask (!%p192_p2), 1044480   ;;  %v725_v20 = vmov (!%p192_p2), 0.0   ;;  %vm298_vm3 = vcmask (!%p192_p2), 1043456   ;;  %s721_s9 = smov (!%p192_p2), 0  }
   0x6   : > { %195 = sbr.rel (%p192_p2) target bundleno = 564 (0x234), region = 36  ;;  %vm279_vm4 = vcmask (!%p192_p2), 1040384  }
   0x7   : > { %v763_v1 = vand.u32 (!%p192_p2), 127, %v251_v0  ;;  %v767_v2 = vshrl.u32 (!%p192_p2), %v251_v0, 7 }
   0x9   : > { %v797_v11 = vsub.s32 (!%p192_p2), 0, %v767_v2  ;;  %v805_v16 = vsub.s32 (!%p192_p2), 1, %v767_v2  ;;  %v255_v63 = vadd.s32 (!%p192_p2), 8, %v767_v2 }
   0xd   : > { %s903_s16 = smov (!%p229_p3, %s624_s16), 1 }
   0xe   : > { %s639_s17 = sshll.u32 %s903_s16, 3  ;;  %s641_s18 = smul.u32 48, %s903_s16 }
   0xf   : > { %s233_s21 = scalar_lea.vmem %s897_s0, %s639_s17  ;;  %s238_s24 = scalar_lea.vmem %s898_s1, %s639_s17 }
  0x10   : > { %s243_s27 = scalar_lea.vmem %s899_s2, %s641_s18  ;;  %s634_s28 = sshll.u32 %s903_s16, 1  ;;  %v257_v3 = vld [vmem:[%s233_s21] sm:$0xff] }
  0x11   : > { %v258_v4 = vld [vmem:[%s238_s24] sm:$0xff]  ;;  %s247_s5 = scalar_lea.vmem %s900_s3, %s634_s28  ;;  %s250_s8 = scalar_lea.vmem %s901_s4, %s903_s16  ;;  %v788_v6 = vld [vmem:[%s243_s27 + $0x8] sm:$0xff]  ;;  %v790_v8 = vld [vmem:[%s243_s27 + $0x10] sm:$0xff] }
  0x12   : > { %v786_v5 = vld [vmem:[%s243_s27] sm:$0xff]  ;;  %v285_v7 = vsub.f32 %v257_v3, %v258_v4  ;;  %v794_v10 = vld [vmem:[%s243_s27 + $0x28] sm:$0x1f]  ;;  %v810_v19 = vld [vmem:[%s243_s27 + $0x18] sm:$0xff]  ;;  %v256_v3 = vadd.s32 16, %v767_v2 }
  0x13   : > { %v792_v9 = vld [vmem:[%s243_s27 + $0x20] sm:$0x1f]  ;;  %v321_v18 = vsel %vm311_vm0, %v794_v10, -inf }
  0x14   : > { %v799_v12 = vld [vmem:[%s247_s5] sm:$0x3]  ;;  %v286_v13 = vand.u32 2147483647, %v285_v7  ;;  %v288_v14 = vmul.f32 0.5, %v285_v7  ;;  %v312_v15 = vsel %vm311_vm0, %v792_v9, -inf  ;;  %v322_v27 = vmax.f32 %v788_v6, %v321_v18 }
  0x15   : > { %vm266_vm1 = vcmp.gt.s32.totalorder %v799_v12, 0  ;;  %v313_v17 = vmax.f32 %v786_v5, %v312_v15  ;;  %v375_v0 = vrot.slane %v799_v12, %v797_v11  ;;  %v379_v4 = vrot.slane %v799_v12, %v805_v16 }
  0x16   : > { %v267_v21 = vsel %vm266_vm1, 1.0, %v725_v20  ;;  %vm287_vm2 = vcmp.lt.f32.partialorder %v286_v13, 1.0  ;;  %v289_v22 = vmul.f32 %v288_v14, %v285_v7  ;;  %v635_v23 = vadd.f32 -0.5, %v286_v13 }
  0x17   : > { %v272_v24 = vrot.slane %v267_v21, %v797_v11  ;;  %v276_v25 = vrot.slane %v267_v21, %v805_v16  ;;  %v314_v26 = vmax.f32 %v313_v17, %v790_v8  ;;  %v323_v31 = vmax.f32 %v322_v27, %v810_v19 }
  0x18   : > { %v291_v28 = vsel %vm287_vm2, %v289_v22, %v635_v23  ;;  %vm380_vm5 = vcmp.eq.s32.totalorder %v767_v2, %v375_v0  ;;  %vm382_vm6 = vcmp.eq.s32.totalorder %v255_v63, %v375_v0  ;;  %vm381_vm7 = vcmp.eq.s32.totalorder %v767_v2, %v379_v4 }
  0x19   : > { %v292_v29 = vcombine.low %v272_v24, %v276_v25  ;;  %v315_v30 = vrot.slane %v314_v26, 4  ;;  %v324_v34 = vrot.slane %v323_v31, 4  ;;  %v280_v38 = vsel %vm279_vm4, %v272_v24, 0.0 }
  0x1a   : > { %v281_v40 = vsel %vm279_vm4, %v276_v25, 0.0  ;;  %vm383_vm8 = vcmp.eq.s32.totalorder %v255_v63, %v379_v4  ;;  %vm384_vm9 = vcmp.eq.s32.totalorder %v256_v3, %v375_v0  ;;  %vm385_vm10 = vcmp.eq.s32.totalorder %v256_v3, %v379_v4 }
  0x1b   : > { %v294_v32 = vmul.f32 %v292_v29, %v291_v28  ;;  %v316_v33 = vmax.f32 %v314_v26, %v315_v30  ;;  %v325_v37 = vmax.f32 %v323_v31, %v324_v34  ;;  %v282_v46 = vadd.f32 %v281_v40, %v280_v38 }
  0x1c   : > { %v386_v13 = vsel %vm380_vm5, %v786_v5, 0.0  ;;  %v388_v14 = vsel %vm382_vm6, %v790_v8, 0.0  ;;  %v387_v17 = vsel %vm381_vm7, %v788_v6, 0.0  ;;  %v389_v18 = vsel %vm383_vm8, %v810_v19, 0.0 }
  0x1d   : > { %v296_v35 = vcombine.high %v294_v32, %v294_v32  ;;  %v299_v36 = vsel %vm298_vm3, %v294_v32, 0.0  ;;  %v317_v41 = vrot.slane %v316_v33, 2  ;;  %v326_v42 = vrot.slane %v325_v37, 2 }
  0x1e   : > { %v390_v21 = vsel %vm384_vm9, %v792_v9, 0.0  ;;  %v391_v23 = vsel %vm385_vm10, %v794_v10, 0.0  ;;  %v392_v25 = vadd.f32 %v388_v14, %v386_v13  ;;  %v401_v29 = vadd.f32 %v389_v18, %v387_v17 }
  0x1f   : > { %v300_v39 = vsel %vm298_vm3, %v296_v35, 0.0  ;;  %v318_v44 = vmax.f32 %v316_v33, %v317_v41  ;;  %v327_v45 = vmax.f32 %v325_v37, %v326_v42  ;;  %v393_v28 = vsel %vm311_vm0, %v390_v21, 0.0 }
  0x20   : > { %v301_v43 = vadd.f32 %v300_v39, %v299_v36  ;;  %v394_v32 = vadd.f32 %v393_v28, %v392_v25 }
  0x21   : > { %v319_v47 = vrot.slane %v318_v44, 1  ;;  %v328_v48 = vrot.slane %v327_v45, 1 }
  0x22   : > { %302 = vadd.xlane.f32.xlu0 %v301_v43  ;;  %v395_v37 = vrot.slane %v394_v32, 4 }
  0x23   : > { %v824_v49 = vmax.f32 %v318_v44, %v319_v47  ;;  %v826_v50 = vmax.f32 %v327_v45, %v328_v48 }
  0x24   : > { %v396_v43 = vadd.f32 %v395_v37, %v394_v32 }
  0x25   : > { %v330_v51 = vsub.f32 %v786_v5, %v824_v49  ;;  %v331_v52 = vsub.f32 %v788_v6, %v826_v50  ;;  %v332_v53 = vsub.f32 %v790_v8, %v824_v49  ;;  %v333_v54 = vsub.f32 %v810_v19, %v826_v50 }
  0x26   : > { %283 = vadd.xlane.f32.xlu0 %v282_v46  ;;  %v334_v55 = vsub.f32 %v792_v9, %v824_v49  ;;  %v335_v56 = vsub.f32 %v794_v10, %v826_v50  ;;  %v402_v8 = vsel %vm311_vm0, %v391_v23, 0.0 }
  0x27   : > { %v336_v57 = vmul.f32 1.442695, %v330_v51  ;;  %v338_v58 = vmul.f32 1.442695, %v331_v52  ;;  %v340_v59 = vmul.f32 1.442695, %v332_v53  ;;  %v403_v10 = vadd.f32 %v402_v8, %v401_v29 }
  0x28   : > { %v342_v60 = vmul.f32 1.442695, %v333_v54  ;;  %v344_v61 = vmul.f32 1.442695, %v334_v55  ;;  %v346_v62 = vmul.f32 1.442695, %v335_v56 }
  0x29   : > { %677 = vpow2.f32 %v336_v57  ;;  %v404_v39 = vrot.slane %v403_v10, 4  ;;  %v397_v51 = vrot.slane %v396_v43, 2  ;;  %v726_v57 = vmov 1966171168  }
  0x2a   : > { %679 = vpow2.f32 %v338_v58  ;;  %v416_v58 = vunpack.c.l.s4 %v726_v57 }
  0x2b   : > { %681 = vpow2.f32 %v340_v59  ;;  %v405_v45 = vadd.f32 %v404_v39, %v403_v10  ;;  %v398_v53 = vadd.f32 %v397_v51, %v396_v43 }
  0x2c   : > { %683 = vpow2.f32 %v342_v60  ;;  %v417_v3 = vunpack.c.0.s8 %v416_v58 }
  0x2d   : > { %685 = vpow2.f32 %v344_v61  ;;  %v406_v52 = vrot.slane %v405_v45, 2  ;;  %v399_v55 = vrot.slane %v398_v53, 1 }
  0x2e   : > { %687 = vpow2.f32 %v346_v62 }
  0x2f   : > { %v407_v54 = vadd.f32 %v406_v52, %v405_v45  ;;  %v400_v62 = vadd.f32 %v399_v55, %v398_v53 }
  0x31   : > { %v408_v56 = vrot.slane %v407_v54, 1 }
  0x33   : > { %v678_v7 = vpop.eup %677  ;;  %v409_v0 = vadd.f32 %v408_v56, %v407_v54 }
  0x34   : > { %v680_v15 = vpop.eup %679 }
  0x35   : > { %v682_v22 = vpop.eup %681 }
  0x36   : > { %v684_v24 = vpop.eup %683  ;;  %v348_v26 = vadd.f32 %v682_v22, %v678_v7 }
  0x37   : > { %v686_v27 = vpop.eup %685  ;;  %v357_v5 = vadd.f32 %v684_v24, %v680_v15  ;;  %v420_v15 = vsub.s32 %v417_v3, %v767_v2 }
  0x38   : > { %v688_v30 = vpop.eup %687  ;;  %v349_v6 = vsel %vm311_vm0, %v686_v27, 0.0 }
  0x39   : > { %v350_v31 = vadd.f32 %v349_v6, %v348_v26  ;;  %v358_v19 = vsel %vm311_vm0, %v688_v30, 0.0 }
  0x3a   : > { %v359_v9 = vadd.f32 %v358_v19, %v357_v5 }
  0x3b   : > { %v351_v33 = vrot.slane %v350_v31, 4 }
  0x3c   : > { %v360_v34 = vrot.slane %v359_v9, 4 }
  0x3d   : > { %v352_v35 = vadd.f32 %v351_v33, %v350_v31  ;;  %v717_v33 = vmov 0  }
  0x3e   : > { %v361_v36 = vadd.f32 %v360_v34, %v359_v9 }
  0x3f   : > { %v353_v38 = vrot.slane %v352_v35, 2 }
  0x40   : > { %v362_v40 = vrot.slane %v361_v36, 2 }
  0x41   : > { %v354_v41 = vadd.f32 %v353_v38, %v352_v35 }
  0x42   : > { %v363_v42 = vadd.f32 %v362_v40, %v361_v36 }
  0x43   : > { %v355_v44 = vrot.slane %v354_v41, 1 }
  0x44   : > { %v364_v46 = vrot.slane %v363_v42, 1 }
  0x45   : > { %v356_v47 = vadd.f32 %v355_v44, %v354_v41 }
  0x46   : > { %v365_v48 = vadd.f32 %v364_v46, %v363_v42 }
  0x47   : > { %689 = vlog2.f32 %v356_v47 }
  0x48   : > { %691 = vlog2.f32 %v365_v48 }
  0x51   : > { %v690_v59 = vpop.eup %689 }
  0x52   : > { %v692_v60 = vpop.eup %691  ;;  %v367_v61 = vmul.f32 0.6931472, %v690_v59 }
  0x53   : > { %v369_v63 = vmul.f32 0.6931472, %v692_v60 }
  0x54   : > { %v370_v4 = vadd.f32 %v367_v61, %v824_v49 }
  0x55   : > { %v371_v7 = vadd.f32 %v369_v63, %v826_v50 }
  0x56   : > { %v410_v13 = vsub.f32 %v370_v4, %v400_v62 }
  0x57   : > { %v411_v14 = vsub.f32 %v371_v7, %v409_v0 }
  0x59   : > { %v414_v17 = vcombine.low %v410_v13, %v411_v14 }
  0x5b   : > { %v421_v18 = vrot.slane %v414_v17, %v420_v15 }
  0x5d   : > { %v428_v21 = vrot.slane %v421_v18, %v420_v15 }
  0x5f   : > { %v430_v22 = vsel %vm266_vm1, 0.0, %v428_v21 }
  0x60   : > { %v437_v23 = vrot.slane %v430_v22, %v797_v11  ;;  %v441_v24 = vrot.slane %v430_v22, %v805_v16 }
  0x62   : > { %v444_v25 = vsel %vm279_vm4, %v437_v23, -inf  ;;  %v445_v49 = vsel %vm279_vm4, %v441_v24, -inf }
  0x63   : > { %v446_v26 = vmax.f32 %v444_v25, %v445_v49 }
  0x65   : > { %447 = vmax.xlane.f32.xlu1 %v446_v26 }
  0xaf   : > { %v303_v50 = vpop.xlane.xlu0 %302 }
  0xb0   : > { %v304_v27 = vsel %vm298_vm3, %v303_v50, 0.0 }
  0xb1   : > { %v305_v2 = vrot.slane %v304_v27, 4 }
  0xb3   : > { %v306_v28 = vadd.f32 %v305_v2, %v304_v27  ;;  %v868_v29 = vpop.xlane.xlu0 %283 }
  0xb4   : > { %v431_v5 = vmul.f32 3.0, %v868_v29 }
  0xb5   : > { %v307_v30 = vrot.slane %v306_v28, 2 }
  0xb6   : > { %v432_v8 = vmin.f32 %v431_v5, 255.0 }
  0xb7   : > { %v308_v6 = vadd.f32 %v307_v30, %v306_v28 }
  0xb9   : > { %v309_v31 = vrot.slane %v308_v6, 1 }
  0xbb   : > { %v310_v19 = vadd.f32 %v309_v31, %v308_v6 }
  0xf2   : > { %v448_v9 = vpop.xlane.xlu1 %447  }
  0xf3   : > { %v713_v32 = vmov %v448_v9  }
  0xf4 LB: >> { %v458_v10 = vsub.s32 %v715_v32, %v719_v33  ;;  %v727_v37 = vmov 0.0   ;;  %s455_s9 = sadd.s32 1, %s723_s9   ;;  %s723_s9 = sphi %s721_s9, %s455_s9   ;;  %v719_v33 = vphi %v717_v33, %v718_v33   ;;  %v715_v32 = vphi %v713_v32, %v474_v32  }
  0xf5   : >> { %p452_p4 = scmp.ge.s32.totalorder %s455_s9, 32  }
  0xf6   : >> { %v459_v34 = vadd.s32 1, %v458_v10  ;;  %vm520_vm0 = vcmp.eq.s32.totalorder (%p452_p4), %v763_v1, 0  ;;  %vm525_vm2 = vcmp.eq.s32.totalorder (%p452_p4), %v763_v1, 2  ;;  %vm528_vm3 = vcmask (%p452_p4), 16384  }
  0xf7   : > { %v521_v61 = vsel (%p452_p4), %vm520_vm0, %v310_v19, 0.0  ;;  %v526_v63 = vsel (%p452_p4), %vm525_vm2, %v868_v29, 0.0 }
  0xf8   : >> { %v460_v35 = vshra.s32 %v459_v34, 1 }
  0xfa   : >> { %v461_v36 = vadd.s32 %v719_v33, %v460_v35 }
  0xfc   : >> { %vm462_vm11 = vcmp.ge.s32.totalorder %v437_v23, %v461_v36  ;;  %vm463_vm12 = vcmp.ge.s32.totalorder %v441_v24, %v461_v36  ;;  %v636_v43 = vadd.s32 4294967295, %v461_v36 }
  0xfd   : >> { %v464_v38 = vsel %vm462_vm11, 1.0, %v727_v37  ;;  %v465_v39 = vsel %vm463_vm12, 1.0, %v727_v37 }
  0xfe   : >> { %v466_v40 = vsel %vm279_vm4, %v464_v38, 0.0  ;;  %v467_v41 = vsel %vm279_vm4, %v465_v39, 0.0 }
  0xff   : >> { %v468_v42 = vadd.f32 %v467_v41, %v466_v40 }
 0x101   : >> { %469 = vadd.xlane.f32.xlu0 %v468_v42 }
 0x18b   : > { %454 = sbr.rel (!%p452_p4) target bundleno = 244 (0xf4), region = 82 }
 0x18e   : >> { %v470_v44 = vpop.xlane.xlu0 %469 }
 0x18f   : >> { %vm471_vm13 = vcmp.ge.f32.partialorder %v470_v44, %v432_v8 }
 0x190   : >> { %v472_v45 = vsel %vm471_vm13, %v461_v36, %v719_v33   ;;  %v474_v32 = vsel %vm471_vm13, %v715_v32, %v636_v43  }
 0x191   : >> { %v718_v33 = vmov %v472_v45   ;;  %v479_v46 = vrot.slane (%p452_p4), %v472_v45, %v797_v11 }
 0x193   : > { %vm481_vm14 = vcmp.gt.f32.partialorder %v430_v22, %v479_v46 }
 0x194   : > { %v482_v47 = vsel %vm481_vm14, 1.0, %v725_v20  ;;  %vm499_vm15 = vmor %vm266_vm1, %vm481_vm14  ;;  %vm522_vm1 = vcmp.eq.s32.totalorder %v763_v1, 1 }
 0x195   : > { %v487_v48 = vrot.slane %v482_v47, %v797_v11  ;;  %v491_v51 = vrot.slane %v482_v47, %v805_v16  ;;  %v500_v52 = vsel %vm499_vm15, %v428_v21, 0.0 }
 0x196   : > { %v505_v53 = vrot.slane %v500_v52, %v797_v11  ;;  %v509_v54 = vrot.slane %v500_v52, %v805_v16 }
 0x197   : > { %v494_v55 = vsel %vm279_vm4, %v487_v48, 0.0  ;;  %v495_v56 = vsel %vm279_vm4, %v491_v51, 0.0 }
 0x198   : > { %v496_v57 = vadd.f32 %v495_v56, %v494_v55  ;;  %v512_v58 = vsel %vm279_vm4, %v505_v53, 0.0  ;;  %v513_v20 = vsel %vm279_vm4, %v509_v54, 0.0 }
 0x199   : > { %v514_v12 = vadd.f32 %v513_v20, %v512_v58 }
 0x19a   : > { %497 = vadd.xlane.f32.xlu0 %v496_v57 }
 0x19e   : > { %515 = vadd.xlane.f32.xlu0 %v514_v12 }
 0x227   : > { %v498_v59 = vpop.xlane.xlu0 %497 }
 0x228   : > { %v517_v60 = vsub.f32 %v432_v8, %v498_v59 }
 0x22a   : > { %v518_v11 = vmul.f32 %v517_v60, %v472_v45 }
 0x22b   : > { %v516_v16 = vpop.xlane.xlu0 %515 }
 0x22c   : > { %v519_v62 = vadd.f32 %v518_v11, %v516_v16 }
 0x22e   : > { %v523_v0 = vsel %vm522_vm1, %v519_v62, 0.0 }
 0x22f   : > { %v524_v3 = vadd.f32 %v523_v0, %v521_v61 }
 0x231   : > { %v527_v4 = vadd.f32 %v526_v63, %v524_v3 }
 0x233   : > { %529 = vst.msk [vmem:[%s250_s8] sm:$0x1] %vm528_vm3, %v527_v4 }
 0x234 PF: > { %s14_s15 = sadd.s32 1, %s711_s15  }
 0x235   : > { %p11_p5 = scmp.ge.s32.totalorder %s14_s15, 4  }
 0x237   :  { %13 = sbr.rel (!%p11_p5) target bundleno = 1 (0x1), region = 93 }

</bundles_post_ra>
